<compile_context>
chip_gen: v5e
topology: v5e:2x2
jax: 0.10.0
libtpu: 0.0.40
codegen_flags: <defaults>
</compile_context>

<pallas_src>
import math
import functools

import jax
import jax.numpy as jnp
from jax.experimental import pallas as pl
from jax.experimental.pallas import tpu as pltpu

K0, K1, K2 = 0.63576, 1.8732, 1.48695  # constants from the module's `self.k`


def _cdiv(a, b):
    return -(-a // b)


# --------------------------------------------------------------------------- #
# Prep kernel (row-tiled over input_size): KL accumulation + effective weights.
# --------------------------------------------------------------------------- #
def _vd_prep_kernel(theta_ref, ls2_ref, w_ref, kld_ref, acc_ref, *,
                    rows_total, block_rows, denom, training, threshold):
    r = pl.program_id(0)
    theta = theta_ref[...]
    ls2 = ls2_ref[...]
    # clip(log_sigma2 - log(theta^2), +-8)
    log_alpha = jnp.clip(ls2 - jnp.log(theta * theta), -8.0, 8.0)
    first = K0 * jax.nn.sigmoid(K1 + K2 * log_alpha)
    second = 0.5 * jnp.log1p(jnp.exp(-log_alpha))
    term = first - second - K0
    if rows_total % block_rows:
        # Mask ragged-tail rows out of the KL sum (their contents are undefined).
        row = jax.lax.broadcasted_iota(jnp.int32, term.shape, 0) + r * block_rows
        term = jnp.where(row < rows_total, term, 0.0)

    @pl.when(r == 0)
    def _():
        acc_ref[0] = 0.0

    acc_ref[0] += jnp.sum(term)

    @pl.when(r == pl.num_programs(0) - 1)
    def _():
        kld_ref[0] = -acc_ref[0] / denom

    if training:
        w_ref[...] = jnp.exp(ls2).astype(w_ref.dtype)                 # exp(log_sigma2)
    else:
        w_ref[...] = jnp.where(log_alpha > threshold, 0.0, theta).astype(w_ref.dtype)


# --------------------------------------------------------------------------- #
# Main kernels: row-tiled matmuls, weights VMEM-resident via constant index_map
# --------------------------------------------------------------------------- #
def _vd_train_kernel(hidden_ref, eps_ref, theta_ref, exp_ls2_ref, out_ref, *,
                     compute_dtype):
    # Element-wise math in f32; only the MXU operands are cast to compute_dtype.
    h = hidden_ref[...].astype(jnp.float32)
    mu = jnp.dot(h.astype(compute_dtype), theta_ref[...],
                 preferred_element_type=jnp.float32)
    var = jnp.dot((h * h).astype(compute_dtype), exp_ls2_ref[...],
                  preferred_element_type=jnp.float32) + 1e-6
    eps = eps_ref[...].astype(jnp.float32)
    # NOTE: reference module does not add bias in training mode.
    out_ref[...] = (mu + jnp.sqrt(var) * eps).astype(out_ref.dtype)


def _vd_eval_kernel(hidden_ref, theta_m_ref, bias_ref, out_ref, *, compute_dtype):
    h = hidden_ref[...].astype(compute_dtype)
    acc = jnp.dot(h, theta_m_ref[...], preferred_element_type=jnp.float32)
    out_ref[...] = (acc + bias_ref[...]).astype(out_ref.dtype)


# --------------------------------------------------------------------------- #
# Wrapper
# --------------------------------------------------------------------------- #
def variational_dropout_forward(x, theta, bias, log_sigma2, *,
                                training=True, threshold=3.0, noise_key=None,
                                block_rows=1024, compute_dtype=jnp.bfloat16,
                                noise_dtype=jnp.bfloat16, out_dtype=None):
    """Forward pass of VariationalDropout.

    x:          [task_size, seq, num_latents]
    theta:      [input_size, out_size]
    bias:       [out_size]
    log_sigma2: [input_size, out_size]
    Returns (result [task_size, -1, num_latents], kld scalar).
    """
    task_size, _, num_latents = x.shape
    hidden = x.reshape(-1, num_latents)          # no wrapper-side astype
    B = hidden.shape[0]
    in_size, out_size = theta.shape
    out_dtype = x.dtype if out_dtype is None else out_dtype
    cd_item = jnp.dtype(compute_dtype).itemsize
    h_item = jnp.dtype(hidden.dtype).itemsize
    o_item = jnp.dtype(out_dtype).itemsize

    theta32 = theta.astype(jnp.float32)
    ls2_32 = log_sigma2.astype(jnp.float32)

    # -------- prep kernel: KL + effective weights (row-tiled) -------- #
    TR = in_size
    max_prep_rows = max(8, ((2 << 20) // max(out_size * 4, 1)) // 8 * 8)
    if TR > max_prep_rows:
        TR = max_prep_rows                        # multiple of 8 by construction
    grid_prep = _cdiv(in_size, TR)
    prep_vmem = (2 * 2 * TR * out_size * 4        # theta + log_sigma2, double-buffered
                 + 2 * TR * out_size * cd_item    # w_eff tiles
                 + (2 << 20))
    w_eff, kld = pl.pallas_call(
        functools.partial(_vd_prep_kernel, rows_total=in_size, block_rows=TR,
                          denom=float(in_size * out_size),
                          training=training, threshold=float(threshold)),
        out_shape=(jax.ShapeDtypeStruct((in_size, out_size), compute_dtype),
                   jax.ShapeDtypeStruct((1,), jnp.float32)),
        grid_spec=pltpu.PrefetchScalarGridSpec(
            num_scalar_prefetch=0, grid=(grid_prep,),
            in_specs=[pl.BlockSpec((TR, out_size), lambda r: (r, 0)),
                      pl.BlockSpec((TR, out_size), lambda r: (r, 0))],
            out_specs=(pl.BlockSpec((TR, out_size), lambda r: (r, 0)),
                       pl.BlockSpec((1,), lambda r: (0,),
                                    memory_space=pltpu.MemorySpace.SMEM)),
            scratch_shapes=[pltpu.SMEM((1,), jnp.float32)]),
        compiler_params=pltpu.CompilerParams(
            dimension_semantics=("arbitrary",),       # KL accumulation order
            vmem_limit_bytes=int(min(max(prep_vmem, 16 << 20), 96 << 20))),
    )(theta32, ls2_32)

    # -------- row-tile selection (pipelined, megacore-parallel) -------- #
    TM = B if B <= block_rows else block_rows
    if TM < B:
        TM = max(16, (TM // 16) * 16)            # bf16-friendly sublane multiple
        steps = _cdiv(B, TM)
        if steps > 1 and steps % 2:              # balance the 2 TCs on v7x
            steps += 1
            TM = max(16, _cdiv(_cdiv(B, steps), 16) * 16)
    grid = (_cdiv(B, TM),)

    if training:
        if noise_key is None:
            noise_key = jax.random.PRNGKey(0)
        eps = jax.random.normal(noise_key, (B, out_size), dtype=noise_dtype)
        theta_c = theta32.astype(compute_dtype)   # cast once, not per tile
        e_item = jnp.dtype(noise_dtype).itemsize

        vmem_bytes = (2 * TM * in_size * h_item                 # hidden tiles
                      + 2 * TM * out_size * (e_item + o_item)   # eps + out tiles
                      + 2 * 2 * in_size * out_size * cd_item    # theta + exp_ls2
                      + (2 << 20))                              # compiler scratch
        cost = pl.CostEstimate(
            flops=int(4 * B * in_size * out_size + B * in_size + 4 * B * out_size),
            transcendentals=int(B * out_size),                  # sqrt
            bytes_accessed=int(B * in_size * h_item
                               + B * out_size * (e_item + o_item)
                               + 2 * in_size * out_size * cd_item))
        gs = pltpu.PrefetchScalarGridSpec(
            num_scalar_prefetch=0, grid=grid,
            in_specs=[pl.BlockSpec((TM, in_size), lambda i: (i, 0)),
                      pl.BlockSpec((TM, out_size), lambda i: (i, 0)),
                      pl.BlockSpec((in_size, out_size), lambda i: (0, 0)),
                      pl.BlockSpec((in_size, out_size), lambda i: (0, 0))],
            out_specs=pl.BlockSpec((TM, out_size), lambda i: (i, 0)))
        out = pl.pallas_call(
            functools.partial(_vd_train_kernel, compute_dtype=compute_dtype),
            out_shape=jax.ShapeDtypeStruct((B, out_size), out_dtype),
            grid_spec=gs, cost_estimate=cost,
            compiler_params=pltpu.CompilerParams(
                dimension_semantics=("parallel",),
                vmem_limit_bytes=int(min(max(vmem_bytes, 16 << 20), 96 << 20))),
        )(hidden, eps, theta_c, w_eff)
    else:
        bias2d = bias.astype(jnp.float32).reshape(1, out_size)
        vmem_bytes = (2 * TM * in_size * h_item
                      + 2 * TM * out_size * o_item
                      + 2 * in_size * out_size * cd_item
                      + 2 * out_size * 4
                      + (2 << 20))
        cost = pl.CostEstimate(
            flops=int(2 * B * in_size * out_size + 2 * B * out_size),
            transcendentals=0,
            bytes_accessed=int(B * in_size * h_item + B * out_size * o_item
                               + in_size * out_size * cd_item + out_size * 4))
        gs = pltpu.PrefetchScalarGridSpec(
            num_scalar_prefetch=0, grid=grid,
            in_specs=[pl.BlockSpec((TM, in_size), lambda i: (i, 0)),
                      pl.BlockSpec((in_size, out_size), lambda i: (0, 0)),
                      pl.BlockSpec((1, out_size), lambda i: (0, 0))],
            out_specs=pl.BlockSpec((TM, out_size), lambda i: (i, 0)))
        out = pl.pallas_call(
            functools.partial(_vd_eval_kernel, compute_dtype=compute_dtype),
            out_shape=jax.ShapeDtypeStruct((B, out_size), out_dtype),
            grid_spec=gs, cost_estimate=cost,
            compiler_params=pltpu.CompilerParams(
                dimension_semantics=("parallel",),
                vmem_limit_bytes=int(min(max(vmem_bytes, 16 << 20), 96 << 20))),
        )(hidden, w_eff, bias2d)

    # No padding => no post-kernel unpad slice; reshape is layout-only.
    result = out.reshape(task_size, -1, num_latents)
    return result, kld[0]


if __name__ == "__main__":
    # Shapes consistent with forward(): input is [task_size, seq, num_latents],
    # and the layer's view() implies input_size == num_latents (square theta).
    task_size, seq, num_latents = 2, 16, 32
    input_size = out_size = num_latents
    log_sigma2_init = -10.0

    key = jax.random.PRNGKey(0)
    k_x, k_theta, k_bias, k_noise = jax.random.split(key, 4)

    stdv = 1.0 / math.sqrt(out_size)
    theta = jax.random.uniform(k_theta, (input_size, out_size),
                               minval=-stdv, maxval=stdv, dtype=jnp.float32)
    bias = jax.random.uniform(k_bias, (out_size,),
                              minval=-stdv, maxval=stdv, dtype=jnp.float32)
    log_sigma2 = jnp.full((input_size, out_size), log_sigma2_init, jnp.float32)
    x = jax.random.normal(k_x, (task_size, seq, num_latents), dtype=jnp.float32)

    # Training-mode forward.  block_rows=16 so the demo exercises a multi-step,
    # pipelined, 2-TC-balanced grid (B=32 rows -> 2 steps of 16).
    result, kl_train = variational_dropout_forward(
        x, theta, bias, log_sigma2, training=True, threshold=3.0,
        noise_key=k_noise, block_rows=16)
    jax.block_until_ready(result)
    jax.block_until_ready(kl_train)

    # Eval-mode forward (thresholded mask + addmm with bias).
    result_eval, kl_eval = variational_dropout_forward(
        x, theta, bias, log_sigma2, training=False, threshold=3.0, block_rows=16)
    jax.block_until_ready(result_eval)

    # ---- light correctness checks against a pure-JAX reference ---- #
    log_alpha = jnp.clip(log_sigma2 - jnp.log(theta * theta), -8.0, 8.0)
    first = K0 * jax.nn.sigmoid(K1 + K2 * log_alpha)
    second = 0.5 * jnp.log1p(jnp.exp(-log_alpha))
    kld_ref = -jnp.sum(first - second - K0) / (input_size * out_size)
    theta_m = jnp.where(log_alpha > 3.0, 0.0, theta)
    eval_ref = (x.reshape(-1, num_latents) @ theta_m + bias).reshape(
        task_size, -1, num_latents)

    assert result.shape == (task_size, seq, num_latents)
    assert result_eval.shape == (task_size, seq, num_latents)
    assert bool(jnp.all(jnp.isfinite(result)))
    assert bool(jnp.allclose(kl_train, kld_ref, atol=1e-2, rtol=1e-3)), (kl_train, kld_ref)
    assert bool(jnp.allclose(kl_eval, kld_ref, atol=1e-2, rtol=1e-3)), (kl_eval, kld_ref)
    assert bool(jnp.allclose(result_eval.astype(jnp.float32), eval_ref,
                             atol=5e-2, rtol=5e-2))
    print("KERNEL_OK")
</pallas_src>

<mosaic_0001>
module attributes {stable_mosaic.version = 11 : i64} {
  func.func @_vd_prep_kernel(%arg0: i32, %arg1: memref<32x32xf32, #tpu.memory_space<vmem>>, %arg2: memref<32x32xf32, #tpu.memory_space<vmem>>, %arg3: memref<32x32xbf16, #tpu.memory_space<vmem>>, %arg4: memref<1xf32, #tpu.memory_space<smem>>, %arg5: memref<1xf32, #tpu.memory_space<smem>>) attributes {dimension_semantics = [#tpu.dimension_semantics<arbitrary>], iteration_bounds = array<i64: 1>, scalar_prefetch = 0 : i64, scratch_operands = 1 : i64, tpu.core_type = #tpu.core_type<tc>, window_params = [{transform_indices = @transform_0, window_bounds = array<i64: 32, 32>}, {transform_indices = @transform_1, window_bounds = array<i64: 32, 32>}, {transform_indices = @transform_2, window_bounds = array<i64: 32, 32>}, {transform_indices = @transform_3, window_bounds = array<i64: 1>}]} {
    %c0 = arith.constant 0 : index
    %c0_0 = arith.constant 0 : index
    %0 = vector.load %arg1[%c0, %c0_0] : memref<32x32xf32, #tpu.memory_space<vmem>>, vector<32x32xf32>
    %c0_1 = arith.constant 0 : index
    %c0_2 = arith.constant 0 : index
    %1 = vector.load %arg2[%c0_1, %c0_2] : memref<32x32xf32, #tpu.memory_space<vmem>>, vector<32x32xf32>
    %2 = arith.mulf %0, %0 : vector<32x32xf32>
    %3 = math.log %2 : vector<32x32xf32>
    %4 = arith.subf %1, %3 : vector<32x32xf32>
    %cst = arith.constant -8.000000e+00 : f32
    %cst_3 = arith.constant 8.000000e+00 : f32
    %5 = vector.broadcast %cst : f32 to vector<32x32xf32>
    %6 = arith.maximumf %5, %4 : vector<32x32xf32>
    %7 = vector.broadcast %cst_3 : f32 to vector<32x32xf32>
    %8 = arith.minimumf %7, %6 : vector<32x32xf32>
    %cst_4 = arith.constant 1.486950e+00 : f32
    %9 = vector.broadcast %cst_4 : f32 to vector<32x32xf32>
    %10 = arith.mulf %9, %8 : vector<32x32xf32>
    %cst_5 = arith.constant 1.873200e+00 : f32
    %11 = vector.broadcast %cst_5 : f32 to vector<32x32xf32>
    %12 = arith.addf %11, %10 : vector<32x32xf32>
    %13 = arith.negf %12 : vector<32x32xf32>
    %14 = math.exp %13 : vector<32x32xf32>
    %cst_6 = arith.constant 1.000000e+00 : f32
    %15 = vector.broadcast %cst_6 : f32 to vector<32x32xf32>
    %16 = arith.addf %15, %14 : vector<32x32xf32>
    %17 = arith.divf %15, %16 : vector<32x32xf32>
    %cst_7 = arith.constant 6.357600e-01 : f32
    %18 = vector.broadcast %cst_7 : f32 to vector<32x32xf32>
    %19 = arith.mulf %18, %17 : vector<32x32xf32>
    %cst_8 = arith.constant 0.000000e+00 : f32
    %20 = vector.broadcast %cst_8 : f32 to vector<32x32xf32>
    %21 = arith.subf %20, %8 : vector<32x32xf32>
    %22 = math.exp %21 : vector<32x32xf32>
    %23 = math.log1p %22 : vector<32x32xf32>
    %cst_9 = arith.constant 5.000000e-01 : f32
    %24 = vector.broadcast %cst_9 : f32 to vector<32x32xf32>
    %25 = arith.mulf %24, %23 : vector<32x32xf32>
    %26 = arith.subf %19, %25 : vector<32x32xf32>
    %cst_10 = arith.constant 6.357600e-01 : f32
    %27 = vector.broadcast %cst_10 : f32 to vector<32x32xf32>
    %28 = arith.subf %26, %27 : vector<32x32xf32>
    %c0_i32 = arith.constant 0 : i32
    %29 = arith.cmpi eq, %arg0, %c0_i32 : i32
    %30 = arith.extui %29 : i1 to i32
    %c0_i32_11 = arith.constant 0 : i32
    %31 = arith.cmpi ne, %30, %c0_i32_11 : i32
    scf.if %31 {
      %cst_19 = arith.constant 0.000000e+00 : f32
      %c0_20 = arith.constant 0 : index
      %45 = memref.load %arg5[%c0_20] : memref<1xf32, #tpu.memory_space<smem>>
      memref.store %cst_19, %arg5[%c0_20] : memref<1xf32, #tpu.memory_space<smem>>
    } else {
    }
    %c0_12 = arith.constant 0 : index
    %32 = memref.load %arg5[%c0_12] : memref<1xf32, #tpu.memory_space<smem>>
    %33 = vector.shape_cast %28 : vector<32x32xf32> to vector<1x32x32xf32>
    %cst_13 = arith.constant dense<0.000000e+00> : vector<1xf32>
    %34 = vector.multi_reduction <add>, %33, %cst_13 [1, 2] : vector<1x32x32xf32> to vector<1xf32>
    %35 = vector.shape_cast %34 : vector<1xf32> to vector<1x1x1xf32>
    %36 = vector.extract %35[0, 0, 0] : f32 from vector<1x1x1xf32>
    %37 = arith.addf %32, %36 : f32
    %c0_14 = arith.constant 0 : index
    %38 = memref.load %arg5[%c0_14] : memref<1xf32, #tpu.memory_space<smem>>
    memref.store %37, %arg5[%c0_14] : memref<1xf32, #tpu.memory_space<smem>>
    %c0_i32_15 = arith.constant 0 : i32
    %39 = arith.cmpi eq, %arg0, %c0_i32_15 : i32
    %40 = arith.extui %39 : i1 to i32
    %c0_i32_16 = arith.constant 0 : i32
    %41 = arith.cmpi ne, %40, %c0_i32_16 : i32
    scf.if %41 {
      %c0_19 = arith.constant 0 : index
      %45 = memref.load %arg5[%c0_19] : memref<1xf32, #tpu.memory_space<smem>>
      %cst_20 = arith.constant 0.000000e+00 : f32
      %46 = arith.subf %cst_20, %45 : f32
      %cst_21 = arith.constant 1.024000e+03 : f32
      %47 = arith.divf %46, %cst_21 : f32
      %c0_22 = arith.constant 0 : index
      %48 = memref.load %arg4[%c0_22] : memref<1xf32, #tpu.memory_space<smem>>
      memref.store %47, %arg4[%c0_22] : memref<1xf32, #tpu.memory_space<smem>>
    } else {
    }
    %42 = math.exp %1 : vector<32x32xf32>
    %43 = arith.truncf %42 : vector<32x32xf32> to vector<32x32xbf16>
    %c0_17 = arith.constant 0 : index
    %c0_18 = arith.constant 0 : index
    %44 = vector.load %arg3[%c0_17, %c0_18] : memref<32x32xbf16, #tpu.memory_space<vmem>>, vector<32x32xbf16>
    tpu.vector_store %arg3[%c0_17, %c0_18], %43 {strides = array<i32>} : memref<32x32xbf16, #tpu.memory_space<vmem>>, vector<32x32xbf16>,
    return
  }
  func.func @transform_0(%arg0: i32) -> (i32, i32) {
    %c0_i32 = arith.constant 0 : i32
    %c0_i32_0 = arith.constant 0 : i32
    return %arg0, %c0_i32 : i32, i32
  }
  func.func @transform_1(%arg0: i32) -> (i32, i32) {
    %c0_i32 = arith.constant 0 : i32
    %c0_i32_0 = arith.constant 0 : i32
    return %arg0, %c0_i32 : i32, i32
  }
  func.func @transform_2(%arg0: i32) -> (i32, i32) {
    %c0_i32 = arith.constant 0 : i32
    %c0_i32_0 = arith.constant 0 : i32
    return %arg0, %c0_i32 : i32, i32
  }
  func.func @transform_3(%arg0: i32) -> i32 {
    %c0_i32 = arith.constant 0 : i32
    %c0_i32_0 = arith.constant 0 : i32
    return %c0_i32 : i32
  }
}

</mosaic_0001>

<bundles_post_ra>
// kernel: tpu_custom_call.1
= control target key start
LH: loop header
LB: loop body
LE: loop exit
PB: predicated region body
PF: predicated region fallthrough
CT: control target
= control target key end

     0   :  { %9 = vsyncpa [#allocation4], 0  ;;  %s658_s0 = inlined_call_operand.hbm [shape: f32[32,32], index: 0, kind: input, shape index: {}]   ;;  %s659_s1 = inlined_call_operand.hbm [shape: f32[32,32], index: 1, kind: input, shape index: {}]   ;;  %s660_s2 = inlined_call_operand.hbm [shape: bf16[32,32], index: 2, kind: output, shape index: {0}]   ;;  %s661_s3 = inlined_call_operand.hbm [shape: f32[1], index: 3, kind: output, shape index: {1}]  }
   0x1   :  { %10 = vsyncpa [#allocation8], 0 }
   0x2   :  { %11 = vsyncpa [#allocation5], 0 }
   0x3   :  { %12 = vsyncpa [#allocation6], 0  ;;  %s17_s14 = sshll.u32 %s658_s0, 4  ;;  %s489_s15 = smov [#allocation3]   ;;  %s18_s14 = int_to_ptr.hbm [resolvable:$true] %s17_s14 }
   0x4   :  { %s19_s16 = sshll.u32 %s489_s15, 4  ;;  %s30_s19 = sshll.u32 %s659_s1, 4  ;;  %s20_s16 = int_to_ptr.vmem [resolvable:$true] %s19_s16  ;;  %s31_s19 = int_to_ptr.hbm [resolvable:$true] %s30_s19 }
   0x5   :  { %s490_s20 = smov 128   ;;  %s491_s21 = smov 8  }
   0x6   :  { %25 = dma.hbm_to_vmem [thread:$0]  %s18_s14, 512, %s20_s16, [#allocation4], %s490_s20, %s490_s20, %s491_s21  }
   0x7   :  { %s492_s22 = smov [#allocation7]  }
   0x8   :  { %s32_s23 = sshll.u32 %s492_s22, 4  ;;  %s33_s23 = int_to_ptr.vmem [resolvable:$true] %s32_s23 }
   0x9   :  { %38 = dma.hbm_to_vmem [thread:$0]  %s31_s19, 512, %s33_s23, [#allocation8], %s490_s20, %s490_s20, %s491_s21  }
   0xa   :  { %481 = dma.done.wait [#allocation4], 512  }
   0xb   :  { %482 = vsyncadd [#allocation4], 4294966784 }
   0xc   :  { %483 = dma.done.wait [#allocation8], 512  }
   0xd   :  { %484 = vsyncadd [#allocation8], 4294966784  ;;  %v47_v0 = vld [vmem:[#allocation3] sm:$0xff]  ;;  %v48_v1 = vld [vmem:[#allocation3 + $0x8] sm:$0xff]  ;;  %s494_s0 = smov [#allocation9]   ;;  %s293_s26 = sshll.u32 %s660_s2, 4  ;;  %s294_s26 = int_to_ptr.hbm [resolvable:$true] %s293_s26 }
   0xe   :  { %v49_v2 = vld [vmem:[#allocation3 + $0x10] sm:$0xff]  ;;  %v50_v3 = vld [vmem:[#allocation3 + $0x18] sm:$0xff]  ;;  %v55_v4 = vmul.f32 %v47_v0, %v47_v0  ;;  %v56_v5 = vmul.f32 %v48_v1, %v48_v1  ;;  %v524_v9 = vld [vmem:[#allocation7] sm:$0xff]  ;;  %s291_s1 = sshll.u32 %s494_s0, 4  ;;  %s495_s27 = smov 64   ;;  %s292_s1 = int_to_ptr.vmem [resolvable:$true] %s291_s1 }
   0xf   :  { %v57_v6 = vmul.f32 %v49_v2, %v49_v2  ;;  %v58_v7 = vmul.f32 %v50_v3, %v50_v3  ;;  %v526_v11 = vld [vmem:[#allocation7 + $0x8] sm:$0xff]  ;;  %v528_v14 = vld [vmem:[#allocation7 + $0x10] sm:$0xff]  ;;  %v530_v17 = vld [vmem:[#allocation7 + $0x18] sm:$0xff]  ;;  %s496_s28 = smov 4   ;;  %s305_s4 = sshll.u32 %s661_s3, 4  ;;  %s306_s4 = int_to_ptr.hbm [resolvable:$true] %s305_s4 }
  0x10   :  { %347 = vlog2.f32 %v55_v4  ;;  %s497_s8 = smov [#allocation10]  }
  0x11   :  { %349 = vlog2.f32 %v56_v5 }
  0x12   :  { %351 = vlog2.f32 %v57_v6 }
  0x13   :  { %353 = vlog2.f32 %v58_v7 }
  0x16   :  { %v348_v8 = vpop.eup %347 }
  0x17   :  { %v350_v10 = vpop.eup %349  ;;  %v60_v12 = vmul.f32 0.6931472, %v348_v8 }
  0x18   :  { %v352_v13 = vpop.eup %351  ;;  %v62_v15 = vmul.f32 0.6931472, %v350_v10 }
  0x19   :  { %v354_v16 = vpop.eup %353  ;;  %v64_v18 = vmul.f32 0.6931472, %v352_v13  ;;  %v67_v19 = vsub.f32 %v524_v9, %v60_v12 }
  0x1a   :  { %v66_v20 = vmul.f32 0.6931472, %v354_v16  ;;  %v68_v21 = vsub.f32 %v526_v11, %v62_v15 }
  0x1b   :  { %v69_v22 = vsub.f32 %v528_v14, %v64_v18  ;;  %v322_v23 = vclamps-f32 %v67_v19, 8.0 }
  0x1c   :  { %v70_v24 = vsub.f32 %v530_v17, %v66_v20  ;;  %v323_v25 = vclamps-f32 %v68_v21, 8.0 }
  0x1d   :  { %v324_v26 = vclamps-f32 %v69_v22, 8.0  ;;  %v79_v27 = vmul.f32 1.48695, %v322_v23  ;;  %v167_v34 = vsub.f32 0.0, %v322_v23 }
  0x1e   :  { %v325_v28 = vclamps-f32 %v70_v24, 8.0  ;;  %v80_v29 = vmul.f32 1.48695, %v323_v25  ;;  %v168_v37 = vsub.f32 0.0, %v323_v25 }
  0x1f   :  { %v81_v30 = vmul.f32 1.48695, %v324_v26  ;;  %v83_v31 = vadd.f32 1.8732, %v79_v27  ;;  %v169_v41 = vsub.f32 0.0, %v324_v26 }
  0x20   :  { %v82_v32 = vmul.f32 1.48695, %v325_v28  ;;  %v84_v33 = vadd.f32 1.8732, %v80_v29  ;;  %v171_v43 = vmul.f32 1.442695, %v167_v34 }
  0x21   :  { %v85_v35 = vadd.f32 1.8732, %v81_v30  ;;  %v326_v36 = vmul.f32 -1.442695, %v83_v31  ;;  %v173_v44 = vmul.f32 1.442695, %v168_v37 }
  0x22   :  { %v86_v38 = vadd.f32 1.8732, %v82_v32  ;;  %v327_v39 = vmul.f32 -1.442695, %v84_v33  ;;  %v170_v45 = vsub.f32 0.0, %v325_v28 }
  0x23   :  { %355 = vpow2.f32 %v326_v36  ;;  %v328_v40 = vmul.f32 -1.442695, %v85_v35  ;;  %v175_v46 = vmul.f32 1.442695, %v169_v41 }
  0x24   :  { %357 = vpow2.f32 %v327_v39  ;;  %v329_v42 = vmul.f32 -1.442695, %v86_v38  ;;  %v177_v52 = vmul.f32 1.442695, %v170_v45 }
  0x25   :  { %359 = vpow2.f32 %v328_v40 }
  0x26   :  { %361 = vpow2.f32 %v329_v42 }
  0x27   :  { %363 = vpow2.f32 %v171_v43 }
  0x28   :  { %365 = vpow2.f32 %v173_v44 }
  0x29   :  { %v356_v47 = vpop.eup %355  ;;  %367 = vpow2.f32 %v175_v46 }
  0x2a   :  { %v358_v48 = vpop.eup %357  ;;  %v99_v49 = vadd.f32 1.0, %v356_v47 }
  0x2b   :  { %v360_v50 = vpop.eup %359  ;;  %v100_v51 = vadd.f32 1.0, %v358_v48 }
  0x2c   :  { %v362_v53 = vpop.eup %361  ;;  %v536_v54 = vadd.f32 1.0, %v360_v50  ;;  %369 = vrcp.f32 %v99_v49  ;;  %v112_v56 = vand.u32 2147483647, %v99_v49  ;;  %v114_v57 = vand.u32 2147483648, %v99_v49 }
  0x2d   :  { %v538_v55 = vadd.f32 1.0, %v362_v53  ;;  %371 = vrcp.f32 %v100_v51  ;;  %v364_v58 = vpop.eup %363  ;;  %v127_v59 = vand.u32 2147483647, %v100_v51  ;;  %v129_v61 = vand.u32 2147483648, %v100_v51 }
  0x2e   :  { %373 = vrcp.f32 %v536_v54  ;;  %v541_v60 = vpop.eup %365  ;;  %v144_v62 = vand.u32 2147483648, %v536_v54  ;;  %vm108_vm0 = vweird.f32 %v99_v49  ;;  %v142_v63 = vand.u32 2147483647, %v536_v54 }
  0x2f   :  { %375 = vpow2.f32 %v177_v52  ;;  %v546_v0 = vpop.eup %367  ;;  %vm548_vm1 = vcmp.eq.f32.partialorder %v112_v56, 8.507059e+37  ;;  %v115_v2 = vor.u32 1.1754944e-38, %v114_v57  ;;  %vm123_vm2 = vweird.f32 %v100_v51 }
  0x30   :  { %377 = vrcp.f32 %v538_v55  ;;  %vm138_vm3 = vweird.f32 %v536_v54  ;;  %vm553_vm4 = vcmp.eq.f32.partialorder %v127_v59, 8.507059e+37  ;;  %v179_v5 = vadd.f32 1.0, %v364_v58 }
  0x31   :  { %v182_v6 = vmul.f32 -0.5, %v364_v58  ;;  %v188_v7 = vadd.f32 1.0, %v541_v60  ;;  %v130_v12 = vor.u32 1.1754944e-38, %v129_v61  ;;  %v145_v13 = vor.u32 1.1754944e-38, %v144_v62 }
  0x32   :  { %v370_v3 = vpop.eup %369  ;;  %v185_v15 = vand.u32 2147483647, %v364_v58  ;;  %vm558_vm6 = vcmp.eq.f32.partialorder %v142_v63, 8.507059e+37  ;;  %v157_v20 = vand.u32 2147483647, %v538_v55  ;;  %379 = vlog2.f32 %v179_v5 }
  0x33   :  { %v372_v8 = vpop.eup %371  ;;  %v104_v10 = vmul.f32 %v370_v3, %v99_v49  ;;  %vm109_vm5 = vweird.f32 %v370_v3  ;;  %vm153_vm8 = vweird.f32 %v538_v55  ;;  %v183_v24 = vadd.f32 1.0, %v182_v6 }
  0x34   :  { %v374_v16 = vpop.eup %373  ;;  %v119_v18 = vmul.f32 %v372_v8, %v100_v51  ;;  %vm124_vm7 = vweird.f32 %v372_v8  ;;  %381 = vlog2.f32 %v188_v7  ;;  %v191_v27 = vmul.f32 -0.5, %v541_v60  ;;  %vm578_vm11 = vmor %vm108_vm0, %vm109_vm5 }
  0x35   :  { %v563_v21 = vpop.eup %375  ;;  %v105_v22 = vsub.f32 1.0, %v104_v10  ;;  %v134_v23 = vmul.f32 %v374_v16, %v536_v54  ;;  %vm139_vm9 = vweird.f32 %v374_v16  ;;  %vm572_vm10 = vcmp.lt.f32.partialorder %v185_v15, 0.0004427343  ;;  %vm586_vm12 = vmor %vm123_vm2, %vm124_vm7 }
  0x36   :  { %v567_v25 = vpop.eup %377  ;;  %v120_v26 = vsub.f32 1.0, %v119_v18  ;;  %v192_v34 = vadd.f32 1.0, %v191_v27  ;;  %v194_v35 = vand.u32 2147483647, %v541_v60  ;;  %v197_v36 = vadd.f32 1.0, %v546_v0  ;;  %vm594_vm13 = vmor %vm138_vm3, %vm139_vm9 }
  0x37   :  { %v106_v28 = vmul.f32 %v370_v3, %v105_v22  ;;  %v135_v29 = vsub.f32 1.0, %v134_v23  ;;  %v149_v30 = vmul.f32 %v567_v25, %v538_v55  ;;  %v200_v41 = vmul.f32 -0.5, %v546_v0 }
  0x38   :  { %v121_v33 = vmul.f32 %v372_v8, %v120_v26  ;;  %v380_v42 = vpop.eup %379  ;;  %v184_v45 = vmul.f32 %v364_v58, %v183_v24  ;;  %v193_v46 = vmul.f32 %v541_v60, %v192_v34  ;;  %383 = vlog2.f32 %v197_v36 }
  0x39   :  { %v107_v37 = vadd.f32 %v370_v3, %v106_v28  ;;  %v136_v39 = vmul.f32 %v374_v16, %v135_v29  ;;  %v150_v40 = vsub.f32 1.0, %v149_v30  ;;  %v181_v50 = vmul.f32 0.6931472, %v380_v42 }
  0x3a   :  { %v122_v43 = vadd.f32 %v372_v8, %v121_v33  ;;  %v382_v51 = vpop.eup %381  ;;  %v201_v54 = vadd.f32 1.0, %v200_v41  ;;  %v203_v56 = vand.u32 2147483647, %v546_v0  ;;  %vm154_vm14 = vweird.f32 %v567_v25 }
  0x3b   :  { %v111_v47 = vsel %vm578_vm11, %v370_v3, %v107_v37  ;;  %v137_v48 = vadd.f32 %v374_v16, %v136_v39  ;;  %v151_v49 = vmul.f32 %v567_v25, %v150_v40  ;;  %vm612_vm15 = vcmp.lt.f32.partialorder %v194_v35, 0.0004427343  ;;  %vm625_vm0 = vmor %vm153_vm8, %vm154_vm14 }
  0x3c   :  { %v116_v52 = vsel %vm548_vm1, %v115_v2, %v111_v47  ;;  %v126_v53 = vsel %vm586_vm12, %v372_v8, %v122_v43  ;;  %v159_v61 = vand.u32 2147483648, %v538_v55  ;;  %v190_v63 = vmul.f32 0.6931472, %v382_v51 }
  0x3d   :  { %v131_v57 = vsel %vm553_vm4, %v130_v12, %v126_v53  ;;  %v141_v58 = vsel %vm594_vm13, %v374_v16, %v137_v48  ;;  %v152_v60 = vadd.f32 %v567_v25, %v151_v49  ;;  %v163_v62 = vmul.f32 0.63576, %v116_v52 }
  0x3e   :  { %v146_v1 = vsel %vm558_vm6, %v145_v13, %v141_v58  ;;  %v164_v2 = vmul.f32 0.63576, %v131_v57  ;;  %v187_v3 = vsel %vm572_vm10, %v184_v45, %v181_v50  ;;  %v202_v4 = vmul.f32 %v546_v0, %v201_v54  ;;  %v384_v5 = vpop.eup %383 }
  0x3f   :  { %v196_v7 = vsel %vm612_vm15, %v193_v46, %v190_v63  ;;  %vm204_vm1 = vcmp.lt.f32.partialorder %v203_v56, 0.0004427343  ;;  %v206_v8 = vadd.f32 1.0, %v563_v21  ;;  %v209_v10 = vmul.f32 -0.5, %v563_v21 }
  0x40   :  { %vm633_vm2 = vcmp.eq.f32.partialorder %v157_v20, 8.507059e+37  ;;  %v199_v0 = vmul.f32 0.6931472, %v384_v5  ;;  %v165_v13 = vmul.f32 0.63576, %v146_v1  ;;  %v215_v55 = vmul.f32 0.5, %v187_v3 }
  0x41   :  { %385 = vlog2.f32 %v206_v8  ;;  %v216_v15 = vmul.f32 0.5, %v196_v7  ;;  %v156_v16 = vsel %vm625_vm0, %v567_v25, %v152_v60  ;;  %v160_v18 = vor.u32 1.1754944e-38, %v159_v61 }
  0x42   :  { %v205_v19 = vsel %vm204_vm1, %v202_v4, %v199_v0  ;;  %v210_v22 = vadd.f32 1.0, %v209_v10  ;;  %v212_v23 = vand.u32 2147483647, %v563_v21  ;;  %v219_v26 = vsub.f32 %v163_v62, %v215_v55 }
  0x43   :  { %v217_v24 = vmul.f32 0.5, %v205_v19  ;;  %v220_v20 = vsub.f32 %v164_v2, %v216_v15  ;;  %vm234_vm3 = vcmask 261120   ;;  %v161_v30 = vsel %vm633_vm2, %v160_v18, %v156_v16 }
  0x44   :  { %v330_v28 = vadd.f32 -0.63576, %v219_v26  ;;  %v211_v31 = vmul.f32 %v563_v21, %v210_v22  ;;  %vm213_vm4 = vcmp.lt.f32.partialorder %v212_v23, 0.0004427343  ;;  %v166_v36 = vmul.f32 0.63576, %v161_v30 }
  0x45   :  { %v221_v27 = vsub.f32 %v165_v13, %v217_v24  ;;  %v331_v29 = vadd.f32 -0.63576, %v220_v20  ;;  %v493_v45 = vmov 1024.0   ;;  %v270_v60 = vmul.f32 1.442695, %v524_v9 }
  0x46   :  { %v235_v33 = vsel %vm234_vm3, %v330_v28, 0.0  ;;  %387 = vrcp.f32 %v493_v45  ;;  %v272_v61 = vmul.f32 1.442695, %v526_v11  ;;  %v274_v62 = vmul.f32 1.442695, %v528_v14 }
  0x47   :  { %v386_v32 = vpop.eup %385  ;;  %v332_v25 = vadd.f32 -0.63576, %v221_v27  ;;  %v236_v34 = vsel %vm234_vm3, %v331_v29, 0.0  ;;  %v276_v63 = vmul.f32 1.442695, %v530_v17  ;;  %389 = vpow2.f32 %v270_v60 }
  0x48   :  { %v208_v35 = vmul.f32 0.6931472, %v386_v32  ;;  %v237_v38 = vadd.f32 %v236_v34, %v235_v33  ;;  %391 = vpow2.f32 %v272_v61  ;;  %vm282_vm6 = vcmask 257024  }
  0x49   :  { %v238_v40 = vsel %vm234_vm3, %v332_v25, 0.0  ;;  %393 = vpow2.f32 %v274_v62 }
  0x4a   :  { %v214_v37 = vsel %vm213_vm4, %v211_v31, %v208_v35  ;;  %v239_v42 = vadd.f32 %v238_v40, %v237_v38  ;;  %395 = vpow2.f32 %v276_v63 }
  0x4b   :  { %v218_v39 = vmul.f32 0.5, %v214_v37 }
  0x4c   :  { %v388_v46 = vpop.eup %387 }
  0x4d   :  { %v222_v41 = vsub.f32 %v166_v36, %v218_v39  ;;  %v260_v47 = vmul.f32 1024.0, %v388_v46  ;;  %vm264_vm5 = vweird.f32 %v388_v46  ;;  %v390_v1 = vpop.eup %389 }
  0x4e   :  { %v392_v2 = vpop.eup %391  ;;  %v278_v3 = vpack.c.bf16 %v390_v1, %v390_v1 }
  0x4f   :  { %v333_v43 = vadd.f32 -0.63576, %v222_v41  ;;  %v261_v48 = vsub.f32 1.0, %v260_v47  ;;  %v394_v9 = vpop.eup %393  ;;  %v279_v4 = vpack.c.bf16 %v392_v2, %v392_v2 }
  0x50   :  { %v396_v11 = vpop.eup %395  ;;  %v280_v14 = vpack.c.bf16 %v394_v9, %v394_v9  ;;  %283 = vst.msk [vmem:[#allocation9] sm:$0xf] %vm282_vm6, %v278_v3 }
  0x51   :  { %v240_v44 = vsel %vm234_vm3, %v333_v43, 0.0  ;;  %v262_v52 = vmul.f32 %v388_v46, %v261_v48  ;;  %v281_v17 = vpack.c.bf16 %v396_v11, %v396_v11  ;;  %284 = vst.msk [vmem:[#allocation9 + $0x4] sm:$0xf] %vm282_vm6, %v279_v4 }
  0x52   :  { %v241_v21 = vadd.f32 %v240_v44, %v239_v42  ;;  %285 = vst.msk [vmem:[#allocation9 + $0x8] sm:$0xf] %vm282_vm6, %v280_v14 }
  0x53   :  { %v263_v56 = vadd.f32 %v388_v46, %v262_v52  ;;  %286 = vst.msk [vmem:[#allocation9 + $0xc] sm:$0xf] %vm282_vm6, %v281_v17 }
  0x54   :  { %242 = vadd.xlane.f32.xlu0 %v241_v21  ;;  %299 = dma.vmem_to_hbm [thread:$0]  %s292_s1, 256, %s294_s26, [#allocation5], %s495_s27, %s495_s27, %s496_s28  }
  0x55   :  { %v265_v59 = vsel %vm264_vm5, %v388_v46, %v263_v56 }
  0xc7   :  { %v243_v49 = vpop.xlane.xlu0 %242 }
  0xc8   :  { %v244_v50 = vrot.slane %v243_v49, 4 }
  0xca   :  { %v245_v51 = vadd.f32 %v244_v50, %v243_v49 }
  0xcc   :  { %v246_v53 = vrot.slane %v245_v51, 2 }
  0xce   :  { %v247_v54 = vadd.f32 %v246_v53, %v245_v51 }
  0xd0   :  { %v248_v57 = vrot.slane %v247_v54, 1 }
  0xd2   :  { %v249_v58 = vadd.f32 %v248_v57, %v247_v54 }
  0xd4   :  { %334 = vpush %v249_v58 }
  0xd5   :  { %336 = vpush %v265_v59 }
 0x105   :  { %s335_s29 = spop %334 }
 0x106   :  { %s258_s5 = ssub.f32 0.0, %s335_s29  ;;  %s337_s6 = spop %336 }
 0x108   :  { %s267_s7 = smul.f32 %s337_s6, %s258_s5 }
 0x10a   :  { %269 = sst [smem:[#allocation10]] %s267_s7 }
 0x10b   :  { %308 = dma.smem_to_hbm %s497_s8, 16, %s306_s4, [#allocation6]  }
 0x10c   :  { %485 = dma.done.wait [#allocation5], 256  }
 0x10d   :  { %486 = vsyncadd [#allocation5], 4294967040 }
 0x10e   :  { %487 = dma.done.wait [#allocation6], 16  }
 0x10f   :  { %488 = vsyncadd [#allocation6], 4294967280 }
 0x110   :  { %317 = sfence }
 0x111   :  { %318 = vsyncpa [#allocation4], 1 }
 0x112   :  { %319 = vsyncpa [#allocation8], 1 }
 0x113   :  { %320 = vsyncpa [#allocation5], 1 }
 0x114   :  { %321 = vsyncpa [#allocation6], 1 }

</bundles_post_ra>
